<compile_context>
chip_gen: v5e
topology: v5e:2x2
jax: 0.10.0
libtpu: 0.0.40
codegen_flags: <defaults>
</compile_context>

<pallas_src>
import functools
import math

import jax
import jax.numpy as jnp
from jax import lax
from jax.experimental import pallas as pl
from jax.experimental.pallas import tpu as pltpu


# ---------------------------------------------------------------------------
# Fast path: table resident in VMEM, gather via one-hot MXU matmul.
# ---------------------------------------------------------------------------
def _embedding_onehot_kernel(idx_ref, table_ref, out_ref, *, scale, vocab):
    """idx_ref:   (tile_m, 1) int32 VMEM block of token ids.
       table_ref: (vocab, d_pad) table, resident in VMEM (single-buffered).
       out_ref:   (tile_m, d_pad) output tile."""
    ids = idx_ref[...]                                             # (tile_m, 1)
    # (tile_m, vocab) one-hot selector; out-of-range ids -> all-zero row.
    hot = (lax.broadcasted_iota(jnp.int32, (ids.shape[0], vocab), 1) == ids)
    hot = hot.astype(table_ref.dtype)
    # Gather on the MXU with f32 accumulation.
    acc = jnp.dot(hot, table_ref[...], preferred_element_type=jnp.float32)
    # One whole-tile scale + one unmasked lane-dense store.
    out_ref[...] = (acc * scale).astype(out_ref.dtype)


# ---------------------------------------------------------------------------
# HBM path: table stays in HBM, rows gathered with pipelined DMAs.
# ---------------------------------------------------------------------------
_HBM_NBUF = 8  # rows in flight


def _embedding_hbm_kernel(idx_ref, table_hbm, out_ref, gbuf, sem,
                          *, tile_m, scale, vocab):
    """idx_ref:   (M_pad,) int32 in SMEM (scalar prefetch).
       table_hbm: (vocab, d_pad) table ref in HBM (memory_space=pl.ANY).
       out_ref:   (tile_m, d_pad) output tile (VMEM).
       gbuf:      (tile_m, d_pad) VMEM gather scratch.
       sem:       (_HBM_NBUF,) DMA semaphores."""
    base = pl.program_id(0) * tile_m

    def issue(t):
        tok = jnp.clip(idx_ref[base + t], 0, vocab - 1)   # bounds-safe gather
        slot = t % _HBM_NBUF
        pltpu.make_async_copy(
            table_hbm.at[pl.ds(tok, 1), :],
            gbuf.at[pl.ds(t, 1), :],
            sem.at[slot],
        ).start()

    # Prime the pipeline (wrapper guarantees tile_m >= _HBM_NBUF).
    for t in range(_HBM_NBUF):
        issue(t)

    def body(t, carry):
        slot = t % _HBM_NBUF
        pltpu.make_async_copy(
            table_hbm.at[pl.ds(0, 1), :],
            gbuf.at[pl.ds(t, 1), :],
            sem.at[slot],
        ).wait()

        @pl.when(t + _HBM_NBUF < tile_m)
        def _():
            issue(t + _HBM_NBUF)

        return carry

    lax.fori_loop(0, tile_m, body, 0)
    # Whole-tile scale + single lane-dense store.
    out_ref[...] = (gbuf[...].astype(jnp.float32) * scale).astype(out_ref.dtype)


# ---------------------------------------------------------------------------
# Wrapper
# ---------------------------------------------------------------------------
def embeddings(x, table, *, tile_m=256, max_table_vmem_bytes=12 * 1024 * 1024):
    """Pallas equivalent of the PyTorch Embeddings.forward:
         out = table[x] * sqrt(d_model)
       x: integer indices of any shape; table: (vocab, d_model)."""
    vocab, d_model = table.shape
    scale = float(math.sqrt(d_model))
    out_dtype = table.dtype
    itemsize = jnp.dtype(table.dtype).itemsize

    lead_shape = x.shape
    idx = x.reshape(-1).astype(jnp.int32)
    m = int(idx.shape[0])
    if m == 0:
        return jnp.zeros((*lead_shape, d_model), out_dtype)

    # Lane-dense feature dim: pad d_model to a multiple of 128 (sliced off below).
    d_pad = pl.cdiv(d_model, 128) * 128
    tbl = table if d_pad == d_model else jnp.pad(
        table, ((0, 0), (0, d_pad - d_model)))

    # tile_m: multiple of 8, >= _HBM_NBUF, no larger than the rounded-up M.
    tile_m = max(8, (int(tile_m) // 8) * 8)
    tile_m = min(tile_m, pl.cdiv(m, 8) * 8)
    m_pad = pl.cdiv(m, tile_m) * tile_m
    if m_pad != m:
        # Padded rows use index 0 (valid) and are sliced off below.
        idx = jnp.concatenate([idx, jnp.zeros((m_pad - m,), jnp.int32)])
    grid_m = m_pad // tile_m

    table_bytes = vocab * d_pad * itemsize
    use_resident = table_bytes <= max_table_vmem_bytes

    if use_resident:
        # --- fast path: VMEM-resident table + one-hot MXU gather -------------
        vmem_needed = (
            table_bytes                              # table, single-buffered
            + 2 * tile_m * d_pad * itemsize          # double-buffered out tiles
            + 2 * tile_m * 128 * 4                   # double-buffered id tiles
            + tile_m * max(vocab, 128) * 4           # one-hot intermediate
            + tile_m * d_pad * 4                     # f32 accumulator tile
        )
        kernel = functools.partial(_embedding_onehot_kernel,
                                   scale=scale, vocab=vocab)
        out = pl.pallas_call(
            kernel,
            out_shape=jax.ShapeDtypeStruct((m_pad, d_pad), out_dtype),
            grid_spec=pltpu.PrefetchScalarGridSpec(
                num_scalar_prefetch=0,
                grid=(grid_m,),
                in_specs=[
                    pl.BlockSpec((tile_m, 1), lambda i: (i, 0)),
                    # Constant block index -> single-buffer the resident table.
                    pl.BlockSpec((vocab, d_pad), lambda i: (0, 0),
                                 pipeline_mode=pl.Buffered(1)),
                ],
                out_specs=pl.BlockSpec((tile_m, d_pad), lambda i: (i, 0)),
            ),
            compiler_params=pltpu.CompilerParams(
                dimension_semantics=("parallel",),
                vmem_limit_bytes=int(min(vmem_needed + (8 << 20), 96 << 20)),
            ),
        )(idx.reshape(m_pad, 1), tbl)
    else:
        # --- HBM path: table in HBM, pipelined DMA row gather ----------------
        vmem_needed = (
            tile_m * d_pad * itemsize                # gather scratch
            + 2 * tile_m * d_pad * itemsize          # double-buffered out tiles
            + tile_m * d_pad * 4                     # f32 scale temp
        )
        kernel = functools.partial(_embedding_hbm_kernel,
                                   tile_m=tile_m, scale=scale, vocab=vocab)
        out = pl.pallas_call(
            kernel,
            out_shape=jax.ShapeDtypeStruct((m_pad, d_pad), out_dtype),
            grid_spec=pltpu.PrefetchScalarGridSpec(
                num_scalar_prefetch=1,               # token ids -> SMEM
                grid=(grid_m,),
                in_specs=[pl.BlockSpec(memory_space=pl.ANY)],   # table in HBM
                out_specs=pl.BlockSpec((tile_m, d_pad),
                                       lambda i, idx_ref: (i, 0)),
                scratch_shapes=[
                    pltpu.VMEM((tile_m, d_pad), table.dtype),
                    pltpu.SemaphoreType.DMA((_HBM_NBUF,)),
                ],
            ),
            compiler_params=pltpu.CompilerParams(
                dimension_semantics=("arbitrary",),
                vmem_limit_bytes=int(min(vmem_needed + (8 << 20), 96 << 20)),
            ),
        )(idx, tbl)

    out = out[:m, :d_model]
    return out.reshape(*lead_shape, d_model)


def init_table(key, vocab, d_model, padding_idx=None, dtype=jnp.float32):
    """nn.Embedding-style init: N(0,1) weights; padding_idx row zeroed."""
    table = jax.random.normal(key, (vocab, d_model), dtype=dtype)
    if padding_idx is not None:
        table = table.at[padding_idx].set(0.0)
    return table


def _reference(x, table):
    d_model = table.shape[1]
    return table[x] * math.sqrt(d_model)


if __name__ == "__main__":
    key = jax.random.PRNGKey(0)
    vocab, d_model = 256, 128
    batch, seq = 2, 8
    padding_idx = 0

    k_tab, k_idx, k_idx2, k_tab2, k_idx3 = jax.random.split(key, 5)
    table = init_table(k_tab, vocab, d_model, padding_idx=padding_idx)

    # Case 1: fast (VMEM-resident one-hot) path; exercises the padding_idx row.
    x = jax.random.randint(k_idx, (batch, seq), 0, vocab, dtype=jnp.int32)
    x = x.at[0, 0].set(padding_idx)
    out = jax.block_until_ready(embeddings(x, table))
    ref = _reference(x, table)
    assert out.shape == (batch, seq, d_model)
    assert jnp.allclose(out, ref, atol=1e-6, rtol=1e-6)
    assert jnp.allclose(out[0, 0], 0.0)                 # padding row stays zero

    # Case 2: M not a multiple of the tile (wrapper pads + slices).
    x_ragged = jax.random.randint(k_idx2, (batch, 5), 0, vocab, dtype=jnp.int32)
    out_ragged = jax.block_until_ready(embeddings(x_ragged, table))
    ref_ragged = _reference(x_ragged, table)
    assert out_ragged.shape == (batch, 5, d_model)
    assert jnp.allclose(out_ragged, ref_ragged, atol=1e-6, rtol=1e-6)

    # Case 3: force the HBM DMA-gather path (large-table fallback) on the same
    # inputs by setting the resident-table budget to zero.
    out_hbm = jax.block_until_ready(
        embeddings(x, table, max_table_vmem_bytes=0))
    assert jnp.allclose(out_hbm, ref, atol=1e-6, rtol=1e-6)
    assert jnp.allclose(out_hbm[0, 0], 0.0)

    # Case 4: d_model not a multiple of 128 (wrapper pads feature dim, slices).
    vocab4, d_model4 = 64, 80
    table4 = init_table(k_tab2, vocab4, d_model4)
    x4 = jax.random.randint(k_idx3, (batch, seq), 0, vocab4, dtype=jnp.int32)
    out4 = jax.block_until_ready(embeddings(x4, table4))
    ref4 = _reference(x4, table4)
    assert out4.shape == (batch, seq, d_model4)
    assert jnp.allclose(out4, ref4, atol=1e-6, rtol=1e-6)

    print("KERNEL_OK")
</pallas_src>

<mosaic_0001>
module attributes {stable_mosaic.version = 11 : i64} {
  func.func @_embedding_onehot_kernel(%arg0: i32, %arg1: memref<16x1xi32, #tpu.memory_space<vmem>>, %arg2: memref<256x128xf32, #tpu.memory_space<vmem>>, %arg3: memref<16x128xf32, #tpu.memory_space<vmem>>) attributes {dimension_semantics = [#tpu.dimension_semantics<parallel>], iteration_bounds = array<i64: 1>, scalar_prefetch = 0 : i64, scratch_operands = 0 : i64, tpu.core_type = #tpu.core_type<tc>, window_params = [{transform_indices = @transform_0, window_bounds = array<i64: 16, 1>}, {pipeline_mode = #tpu.pipeline_mode<synchronous>, transform_indices = @transform_1, window_bounds = array<i64: 256, 128>}, {transform_indices = @transform_2, window_bounds = array<i64: 16, 128>}]} {
    %c0 = arith.constant 0 : index
    %c0_0 = arith.constant 0 : index
    %0 = vector.load %arg1[%c0, %c0_0] : memref<16x1xi32, #tpu.memory_space<vmem>>, vector<16x1xi32>
    %1 = tpu.iota {dimensions = array<i32: 1>} : vector<16x256xi32>
    %2 = vector.broadcast %0 : vector<16x1xi32> to vector<16x256xi32>
    %3 = arith.cmpi eq, %1, %2 : vector<16x256xi32>
    %4 = arith.extui %3 : vector<16x256xi1> to vector<16x256xi32>
    %5 = arith.sitofp %4 : vector<16x256xi32> to vector<16x256xf32>
    %c0_1 = arith.constant 0 : index
    %c0_2 = arith.constant 0 : index
    %6 = vector.load %arg2[%c0_1, %c0_2] : memref<256x128xf32, #tpu.memory_space<vmem>>, vector<256x128xf32>
    %cst = arith.constant dense<0.000000e+00> : vector<16x128xf32>
    %7 = tpu.matmul %5, %6, %cst {dimension_numbers = #tpu.dot_dimension_numbers<[1], [0], [0], [1], [0, 0, 1, 1], [], []>} : vector<16x256xf32>, vector<256x128xf32>, vector<16x128xf32> -> vector<16x128xf32>
    %cst_3 = arith.constant 11.3137083 : f32
    %8 = vector.broadcast %cst_3 : f32 to vector<16x128xf32>
    %9 = arith.mulf %7, %8 : vector<16x128xf32>
    %c0_4 = arith.constant 0 : index
    %c0_5 = arith.constant 0 : index
    %10 = vector.load %arg3[%c0_4, %c0_5] : memref<16x128xf32, #tpu.memory_space<vmem>>, vector<16x128xf32>
    tpu.vector_store %arg3[%c0_4, %c0_5], %9 {strides = array<i32>} : memref<16x128xf32, #tpu.memory_space<vmem>>, vector<16x128xf32>,
    return
  }
  func.func @transform_0(%arg0: i32) -> (i32, i32) {
    %c0_i32 = arith.constant 0 : i32
    %c0_i32_0 = arith.constant 0 : i32
    return %arg0, %c0_i32 : i32, i32
  }
  func.func @transform_1(%arg0: i32) -> (i32, i32) {
    %c0_i32 = arith.constant 0 : i32
    %c0_i32_0 = arith.constant 0 : i32
    %c0_i32_1 = arith.constant 0 : i32
    return %c0_i32, %c0_i32_0 : i32, i32
  }
  func.func @transform_2(%arg0: i32) -> (i32, i32) {
    %c0_i32 = arith.constant 0 : i32
    %c0_i32_0 = arith.constant 0 : i32
    return %arg0, %c0_i32 : i32, i32
  }
}

</mosaic_0001>

<bundles_post_ra>
// kernel: tpu_custom_call.1
= control target key start
LH: loop header
LB: loop body
LE: loop exit
PB: predicated region body
PF: predicated region fallthrough
CT: control target
= control target key end

     0   :  { %7 = vsyncpa [#allocation3], 0  ;;  %s290_s0 = inlined_call_operand.vmem [shape: s32[16,1], index: 0, kind: input, shape index: {}]   ;;  %s291_s1 = inlined_call_operand.hbm [shape: f32[256,128], index: 1, kind: input, shape index: {}]   ;;  %s292_s2 = inlined_call_operand.hbm [shape: f32[16,128], index: 2, kind: output, shape index: {}]  }
   0x1   :  { %8 = vsyncpa [#allocation4], 0  ;;  %s15_s11 = sshll.u32 %s291_s1, 4  ;;  %s251_s12 = smov [#allocation2]   ;;  %s16_s11 = int_to_ptr.hbm [resolvable:$true] %s15_s11 }
   0x2   :  { %s17_s13 = sshll.u32 %s251_s12, 4  ;;  %s252_s14 = smov 128   ;;  %s18_s13 = int_to_ptr.vmem [resolvable:$true] %s17_s13 }
   0x3   :  { %s253_s15 = smov 8  }
   0x4   :  { %23 = dma.hbm_to_vmem [thread:$0]  %s16_s11, 4096, %s18_s13, [#allocation3], %s252_s14, %s252_s14, %s253_s15  }
   0x5   :  { %247 = dma.done.wait [#allocation3], 4096  }
   0x6   :  { %248 = vsyncadd [#allocation3], 4294963200  ;;  %v254_v0 = vmov 0   ;;  %v29_v1 = vld [vmem:[%s290_s0 + $0x8] sm:$0xff]  ;;  %v66_v2 = vld [vmem:[#allocation2 + $0x78] sm:$0xff]  ;;  %v30_v35 = vlaneseq  ;;  %v255_v39 = vmov 1.0  }
   0x7   :  { %198 = vset.pattern.permute.xlu0 %v254_v0  ;;  %160 = vmatpush.msra.mxu2 %v66_v2  ;;  %v82_v3 = vld [vmem:[#allocation2 + $0xf8] sm:$0xff]  ;;  %v65_v4 = vld [vmem:[#allocation2 + $0x70] sm:$0xff]  ;;  %v64_v6 = vld [vmem:[#allocation2 + $0x68] sm:$0xff]  ;;  %s139_s22 = sshll.u32 %s292_s2, 4  ;;  %s140_s22 = int_to_ptr.hbm [resolvable:$true] %s139_s22 }
   0x8   :  { %37 = vperm.xlu0 %198, %v29_v1   ;;  %v81_v5 = vld [vmem:[#allocation2 + $0xf0] sm:$0xff]  ;;  %176 = vmatpush.msra.mxu3 %v82_v3  ;;  %v80_v7 = vld [vmem:[#allocation2 + $0xe8] sm:$0xff]  ;;  %v63_v8 = vld [vmem:[#allocation2 + $0x60] sm:$0xff]  ;;  %v31_v36 = vand.u32 127, %v30_v35 }
   0x9   :  { %83 = vmatpush.msra.mxu0 %v66_v2  ;;  %161 = vmatpush.msra.mxu2 %v65_v4  ;;  %v79_v9 = vld [vmem:[#allocation2 + $0xe0] sm:$0xff]  ;;  %v62_v11 = vld [vmem:[#allocation2 + $0x58] sm:$0xff]  ;;  %v61_v13 = vld [vmem:[#allocation2 + $0x50] sm:$0xff] }
   0xa   :  { %106 = vmatpush.msra.mxu1 %v82_v3  ;;  %177 = vmatpush.msra.mxu3 %v81_v5  ;;  %v28_v10 = vld [vmem:[%s290_s0] sm:$0xff]  ;;  %v78_v12 = vld [vmem:[#allocation2 + $0xd8] sm:$0xff]  ;;  %v77_v14 = vld [vmem:[#allocation2 + $0xd0] sm:$0xff]  ;;  %v32_v37 = vadd.s32 128, %v31_v36  ;;  %s256_s0 = smov [#allocation5]  }
   0xb   :  { %84 = vmatpush.msra.mxu0 %v65_v4  ;;  %162 = vmatpush.msra.mxu2 %v64_v6  ;;  %v60_v15 = vld [vmem:[#allocation2 + $0x48] sm:$0xff]  ;;  %v59_v17 = vld [vmem:[#allocation2 + $0x40] sm:$0xff]  ;;  %v58_v19 = vld [vmem:[#allocation2 + $0x38] sm:$0xff]  ;;  %s137_s19 = sshll.u32 %s256_s0, 4  ;;  %s138_s19 = int_to_ptr.vmem [resolvable:$true] %s137_s19 }
   0xc   :  { %107 = vmatpush.msra.mxu1 %v81_v5  ;;  %178 = vmatpush.msra.mxu3 %v80_v7  ;;  %v76_v16 = vld [vmem:[#allocation2 + $0xc8] sm:$0xff]  ;;  %v75_v18 = vld [vmem:[#allocation2 + $0xc0] sm:$0xff]  ;;  %v74_v20 = vld [vmem:[#allocation2 + $0xb8] sm:$0xff] }
   0xd   :  { %85 = vmatpush.msra.mxu0 %v64_v6  ;;  %163 = vmatpush.msra.mxu2 %v63_v8  ;;  %v57_v21 = vld [vmem:[#allocation2 + $0x30] sm:$0xff]  ;;  %v56_v23 = vld [vmem:[#allocation2 + $0x28] sm:$0xff]  ;;  %v55_v25 = vld [vmem:[#allocation2 + $0x20] sm:$0xff] }
   0xe   :  { %108 = vmatpush.msra.mxu1 %v80_v7  ;;  %179 = vmatpush.msra.mxu3 %v79_v9  ;;  %v73_v22 = vld [vmem:[#allocation2 + $0xb0] sm:$0xff]  ;;  %v72_v24 = vld [vmem:[#allocation2 + $0xa8] sm:$0xff]  ;;  %v71_v26 = vld [vmem:[#allocation2 + $0xa0] sm:$0xff] }
   0xf   :  { %86 = vmatpush.msra.mxu0 %v63_v8  ;;  %164 = vmatpush.msra.mxu2 %v62_v11  ;;  %v54_v27 = vld [vmem:[#allocation2 + $0x18] sm:$0xff]  ;;  %v53_v29 = vld [vmem:[#allocation2 + $0x10] sm:$0xff]  ;;  %v52_v31 = vld [vmem:[#allocation2 + $0x8] sm:$0xff] }
  0x10   :  { %34 = vperm.xlu0 %198, %v28_v10   ;;  %180 = vmatpush.msra.mxu3 %v78_v12  ;;  %v70_v28 = vld [vmem:[#allocation2 + $0x98] sm:$0xff]  ;;  %v69_v30 = vld [vmem:[#allocation2 + $0x90] sm:$0xff]  ;;  %v68_v32 = vld [vmem:[#allocation2 + $0x88] sm:$0xff] }
  0x11   :  { %109 = vmatpush.msra.mxu1 %v79_v9  ;;  %165 = vmatpush.msra.mxu2 %v61_v13  ;;  %v51_v33 = vld [vmem:[#allocation2] sm:$0xff] }
  0x12   :  { %87 = vmatpush.msra.mxu0 %v62_v11  ;;  %181 = vmatpush.msra.mxu3 %v77_v14  ;;  %v67_v34 = vld [vmem:[#allocation2 + $0x80] sm:$0xff] }
  0x13   :  { %110 = vmatpush.msra.mxu1 %v78_v12  ;;  %166 = vmatpush.msra.mxu2 %v60_v15 }
  0x14   :  { %88 = vmatpush.msra.mxu0 %v61_v13  ;;  %182 = vmatpush.msra.mxu3 %v76_v16 }
  0x15   :  { %111 = vmatpush.msra.mxu1 %v77_v14  ;;  %167 = vmatpush.msra.mxu2 %v59_v17 }
  0x16   :  { %89 = vmatpush.msra.mxu0 %v60_v15  ;;  %183 = vmatpush.msra.mxu3 %v75_v18 }
  0x17   :  { %112 = vmatpush.msra.mxu1 %v76_v16  ;;  %168 = vmatpush.msra.mxu2 %v58_v19 }
  0x18   :  { %90 = vmatpush.msra.mxu0 %v59_v17  ;;  %184 = vmatpush.msra.mxu3 %v74_v20 }
  0x19   :  { %113 = vmatpush.msra.mxu1 %v75_v18  ;;  %169 = vmatpush.msra.mxu2 %v57_v21 }
  0x1a   :  { %91 = vmatpush.msra.mxu0 %v58_v19  ;;  %185 = vmatpush.msra.mxu3 %v73_v22 }
  0x1b   :  { %114 = vmatpush.msra.mxu1 %v74_v20  ;;  %170 = vmatpush.msra.mxu2 %v56_v23 }
  0x1c   :  { %92 = vmatpush.msra.mxu0 %v57_v21  ;;  %186 = vmatpush.msra.mxu3 %v72_v24 }
  0x1d   :  { %115 = vmatpush.msra.mxu1 %v73_v22  ;;  %171 = vmatpush.msra.mxu2 %v55_v25 }
  0x1e   :  { %93 = vmatpush.msra.mxu0 %v56_v23  ;;  %187 = vmatpush.msra.mxu3 %v71_v26 }
  0x1f   :  { %116 = vmatpush.msra.mxu1 %v72_v24  ;;  %172 = vmatpush.msra.mxu2 %v54_v27 }
  0x20   :  { %94 = vmatpush.msra.mxu0 %v55_v25  ;;  %188 = vmatpush.msra.mxu3 %v70_v28 }
  0x21   :  { %117 = vmatpush.msra.mxu1 %v71_v26  ;;  %173 = vmatpush.msra.mxu2 %v53_v29 }
  0x22   :  { %95 = vmatpush.msra.mxu0 %v54_v27  ;;  %189 = vmatpush.msra.mxu3 %v69_v30 }
  0x23   :  { %118 = vmatpush.msra.mxu1 %v70_v28  ;;  %174 = vmatpush.msra.mxu2 %v52_v31 }
  0x24   :  { %96 = vmatpush.msra.mxu0 %v53_v29  ;;  %190 = vmatpush.msra.mxu3 %v68_v32 }
  0x25   :  { %119 = vmatpush.msra.mxu1 %v69_v30  ;;  %175 = vmatpush.msra.mxu2 %v51_v33 }
  0x26   :  { %97 = vmatpush.msra.mxu0 %v52_v31  ;;  %191 = vmatpush.msra.mxu3 %v67_v34 }
  0x27   :  { %120 = vmatpush.msra.mxu1 %v68_v32 }
  0x28   :  { %98 = vmatpush.msra.mxu0 %v51_v33 }
  0x29   :  { %121 = vmatpush.msra.mxu1 %v67_v34 }
  0x7a   :  { %v38_v38 = vpop.permute.xlu0 %37 }
  0x7b   :  { %vm41_vm0 = vcmp.eq.s32.totalorder %v31_v36, %v38_v38  ;;  %vm42_vm1 = vcmp.eq.s32.totalorder %v32_v37, %v38_v38 }
  0x7c   :  { %157 = vmatmul.msk.f32.vlgmr.msra.gmra.mxu2 %vm41_vm0, %v255_v39  ;;  %159 = vmatmul.msk.f32.vlgmr.msra.gmra.mxu3 %vm42_vm1, %v255_v39 }
  0x82   :  { %v35_v40 = vpop.permute.xlu0 %34 }
  0x83   :  { %vm39_vm2 = vcmp.eq.s32.totalorder %v31_v36, %v35_v40  ;;  %vm40_vm3 = vcmp.eq.s32.totalorder %v32_v37, %v35_v40 }
  0x84   :  { %156 = vmatmul.msk.f32.vlgmr.msra.gmra.mxu0 %vm39_vm2, %v255_v39  ;;  %158 = vmatmul.msk.f32.vlgmr.msra.gmra.mxu1 %vm40_vm3, %v255_v39 }
  0xff   :  { %v103_v41 = vpop.f32.mrf.mxu2  ;;  %v126_v42 = vpop.f32.mrf.mxu3 }
 0x100   :  { %v127_v43 = vadd.f32 %v126_v42, %v103_v41 }
 0x101   :  { %v100_v44 = vpop.f32.mrf.mxu0  ;;  %v123_v45 = vpop.f32.mrf.mxu1 }
 0x102   :  { %v130_v46 = vmul.f32 11.313708, %v127_v43  ;;  %v124_v47 = vadd.f32 %v123_v45, %v100_v44 }
 0x104   :  { %132 = vst [vmem:[#allocation5 + $0x8] sm:$0xff] %v130_v46  ;;  %v129_v48 = vmul.f32 11.313708, %v124_v47 }
 0x106   :  { %131 = vst [vmem:[#allocation5] sm:$0xff] %v129_v48 }
 0x107   :  { %145 = dma.vmem_to_hbm [thread:$0]  %s138_s19, 256, %s140_s22, [#allocation4], %s252_s14, %s252_s14, %s253_s15  }
 0x108   :  { %249 = dma.done.wait [#allocation4], 256  }
 0x109   :  { %250 = vsyncadd [#allocation4], 4294967040 }
 0x10a   :  { %150 = vsyncpa [#allocation3], 1 }
 0x10b   :  { %151 = vsyncpa [#allocation4], 1 }

</bundles_post_ra>
